<compile_context>
chip_gen: v7x
topology: tpu7x:2x2x1
jax: 0.10.0
libtpu: 0.0.40
codegen_flags: <defaults>
</compile_context>

<pallas_src>
import functools
from typing import Tuple, Union

import jax
import jax.numpy as jnp
import numpy as np
from jax.experimental import pallas as pl
from jax.experimental.pallas import tpu as pltpu


# ----------------------------- index / selection helpers -----------------------------

def _nearest_indices(out_size: int, in_size: int) -> np.ndarray:
    # PyTorch mode='nearest': src = floor(dst * in / out), clamped.
    dst = np.arange(out_size, dtype=np.int64)
    src = (dst * in_size) // out_size
    return np.clip(src, 0, in_size - 1).astype(np.int32)


def _selection_matrix_np(out_size: int, in_size: int) -> np.ndarray:
    # One-hot (out_size, in_size) matrix selecting the nearest source index per output.
    idx = _nearest_indices(out_size, in_size)
    m = np.zeros((out_size, in_size), dtype=np.float32)
    m[np.arange(out_size), idx] = 1.0
    return m


def _resolve_size(size: Union[int, Tuple[int, int]], h: int, w: int) -> Tuple[int, int]:
    # torchvision Resize: int -> short edge = size, long edge = int(size * long / short).
    if isinstance(size, int):
        if h <= w:
            return size, int(size * w / h)
        return int(size * h / w), size
    return int(size[0]), int(size[1])


# ----------------------------- VMEM budgeting -----------------------------

def _padded_plane_bytes(rows: int, cols: int, itemsize: int) -> int:
    # VMEM tile padding: sublanes to x8, lanes to x128.
    return ((rows + 7) // 8 * 8) * ((cols + 127) // 128 * 128) * itemsize


def _vmem_budget_and_limit() -> Tuple[int, int]:
    # Generation-aware VMEM budget: 128 MiB parts (v5e/v6e) get a big budget; 64 MiB
    # parts (v7x) or an unknown chip get a conservative one.
    cap = None
    try:
        cap = int(pltpu.get_tpu_info().vmem_capacity_bytes)
    except Exception:
        cap = None
    if cap is not None and cap >= 100 * 1024 * 1024:
        return 64 * 1024 * 1024, 100 * 1024 * 1024
    return 40 * 1024 * 1024, 48 * 1024 * 1024


def _pick_w_tile(w_out: int, h_in: int) -> int:
    # Lane-dense output tiles (multiples of 128); keep the per-plane f32 intermediate
    # (h_in x TW) around <= 256 KiB.  Small W_out stays untiled (single full tile).
    if w_out <= 256:
        return w_out
    max_tw = (256 * 1024) // (4 * max(h_in, 1))
    max_tw = max(256, (max_tw // 128) * 128)
    if max_tw >= w_out:
        return w_out
    for tw in range(max_tw, 127, -128):          # prefer a tile that divides W_out
        if w_out % tw == 0:
            return tw
    return max_tw


def _pick_plane_batch(nc: int, h_in: int, w_in: int, h_out: int, tw: int,
                      in_item: int, cd_item: int, budget: int) -> int:
    # Per-grid-step VMEM footprint model (padded to the (8, 128) tile grid).
    fixed = (2 * _padded_plane_bytes(h_out, h_in, cd_item)      # sh (double buffered)
             + 2 * _padded_plane_bytes(w_in, tw, cd_item)       # swt tile (double buffered)
             + 4 * _padded_plane_bytes(h_out, tw, 4))           # unrolled per-plane f32 results
    per_plane = (2 * _padded_plane_bytes(h_in, w_in, in_item)   # input block (double buffered)
                 + _padded_plane_bytes(h_in, w_in, cd_item)     # in-kernel upcast copy
                 + _padded_plane_bytes(h_in, tw, 4)             # f32 fat-matmul result
                 + _padded_plane_bytes(h_in, tw, cd_item)       # compute-dtype scratch copy
                 + 2 * _padded_plane_bytes(h_out, tw, in_item)) # output block (double buffered)
    avail = max(budget - fixed, per_plane)
    max_tb = max(1, avail // max(per_plane, 1))
    if nc >= 2:                                  # keep >= 2 grid steps (v7x megacore)
        max_tb = min(max_tb, nc // 2)
    tb = 1
    for d in range(1, nc + 1):
        if nc % d == 0 and d <= max_tb:
            tb = d
    return tb


# ----------------------------- kernel -----------------------------

def _resize_kernel(sh_ref, swt_ref, x_ref, o_ref, t_ref, *, unroll: int):
    # sh_ref:  (H_out, H_in)     one-hot row-selection matrix
    # swt_ref: (W_in, TW)        one-hot col-selection matrix tile (transposed)
    # x_ref:   (TB, H_in, W_in)  batch of input planes
    # o_ref:   (TB, H_out, TW)   batch of output plane tiles
    # t_ref:   (TB*H_in, TW)     scratch: batched W-selection result
    cd = t_ref.dtype
    tb, h_in, w_in = x_ref.shape
    h_aligned = (h_in % 8) == 0

    # One fat MXU matmul for the W-selection across the whole plane batch.
    x2 = x_ref[...].reshape(tb * h_in, w_in).astype(cd)
    t_ref[...] = jnp.dot(x2, swt_ref[...],
                         preferred_element_type=jnp.float32).astype(cd)

    sh = sh_ref[...]

    def body(b, carry):
        off = b * h_in
        if h_aligned:
            off = pl.multiple_of(off, 8)
        ts = t_ref[pl.ds(off, h_in), :]                               # (H_in, TW)
        ob = jnp.dot(sh, ts, preferred_element_type=jnp.float32)      # (H_out, TW)
        o_ref[b] = ob.astype(o_ref.dtype)
        return carry

    jax.lax.fori_loop(0, tb, body, 0, unroll=unroll)


# ----------------------------- wrapper -----------------------------

@functools.partial(jax.jit, static_argnames=("size",))
def scaler_forward(x: jnp.ndarray, size: Union[int, Tuple[int, int]]) -> jnp.ndarray:
    """Nearest-neighbor resize of an NCHW tensor to `size` (hot path in Pallas)."""
    n, c, h_in, w_in = x.shape
    h_out, w_out = _resolve_size(size, h_in, w_in)
    nc = n * c

    # bf16 selection matrices only when the data is bf16 (one-hot matmul stays bit
    # exact); every other dtype goes through f32.
    compute_dtype = jnp.bfloat16 if x.dtype == jnp.bfloat16 else jnp.float32
    cd_item = jnp.dtype(compute_dtype).itemsize
    in_item = jnp.dtype(x.dtype).itemsize

    sh = jnp.asarray(_selection_matrix_np(h_out, h_in), dtype=compute_dtype)      # (H_out, H_in)
    swt = jnp.asarray(_selection_matrix_np(w_out, w_in).T, dtype=compute_dtype)   # (W_in, W_out)

    budget, vmem_limit = _vmem_budget_and_limit()
    tw = _pick_w_tile(w_out, h_in)
    n_w_tiles = pl.cdiv(w_out, tw)
    tb = _pick_plane_batch(nc, h_in, w_in, h_out, tw, in_item, cd_item, budget)

    # Unroll of the per-plane H-select loop, scaled by its live intermediate size.
    live = _padded_plane_bytes(h_in, tw, cd_item) + _padded_plane_bytes(h_out, tw, 4)
    unroll = int(max(1, min(4, (256 * 1024) // max(live, 1), tb)))

    x_flat = x.reshape(nc, h_in, w_in)
    kernel = functools.partial(_resize_kernel, unroll=unroll)

    cost = pl.CostEstimate(
        flops=2 * nc * w_out * (h_in * w_in + h_out * h_in),
        transcendentals=0,
        bytes_accessed=nc * (h_in * w_in + h_out * w_out) * in_item
        + (sh.size + swt.size) * cd_item,
    )

    out_flat = pl.pallas_call(
        kernel,
        out_shape=jax.ShapeDtypeStruct((nc, h_out, w_out), x.dtype),
        grid_spec=pltpu.PrefetchScalarGridSpec(
            num_scalar_prefetch=0,
            grid=(nc // tb, n_w_tiles),
            in_specs=[
                pl.BlockSpec((h_out, h_in), lambda i, j: (0, 0)),          # sh (resident)
                pl.BlockSpec((w_in, tw), lambda i, j: (0, j)),             # swt W-tile
                pl.BlockSpec((tb, h_in, w_in), lambda i, j: (i, 0, 0)),    # input planes
            ],
            out_specs=pl.BlockSpec((tb, h_out, tw), lambda i, j: (i, 0, j)),
            scratch_shapes=[pltpu.VMEM((tb * h_in, tw), compute_dtype)],
        ),
        compiler_params=pltpu.CompilerParams(
            dimension_semantics=("parallel", "arbitrary"),
            vmem_limit_bytes=vmem_limit,
        ),
        cost_estimate=cost,
    )(sh, swt, x_flat)

    return out_flat.reshape(n, c, h_out, w_out)


# ----------------------------- reference & test -----------------------------

def _reference_nearest_resize(x: jnp.ndarray, size) -> jnp.ndarray:
    n, c, h_in, w_in = x.shape
    h_out, w_out = _resolve_size(size, h_in, w_in)
    hi = _nearest_indices(h_out, h_in)
    wi = _nearest_indices(w_out, w_in)
    return x[:, :, hi, :][:, :, :, wi]


if __name__ == "__main__":
    key = jax.random.PRNGKey(0)
    # Scaler(size=(32, 32)) applied to a small NCHW batch.
    x = jax.random.normal(key, (2, 4, 16, 16), dtype=jnp.float32)
    size = (32, 32)

    out = scaler_forward(x, size)
    out = jax.block_until_ready(out)

    ref = _reference_nearest_resize(x, size)
    assert out.shape == (2, 4, 32, 32), out.shape
    assert jnp.allclose(out, ref, rtol=0.0, atol=1e-6), "mismatch vs nearest reference"

    print("KERNEL_OK")
</pallas_src>

<mosaic_0001>
module attributes {stable_mosaic.version = 11 : i64} {
  func.func @_resize_kernel(%arg0: i32, %arg1: i32, %arg2: memref<32x16xf32, #tpu.memory_space<vmem>>, %arg3: memref<16x32xf32, #tpu.memory_space<vmem>>, %arg4: memref<4x16x16xf32, #tpu.memory_space<vmem>>, %arg5: memref<4x32x32xf32, #tpu.memory_space<vmem>>, %arg6: memref<64x32xf32, #tpu.memory_space<vmem>>) attributes {dimension_semantics = [#tpu.dimension_semantics<parallel>, #tpu.dimension_semantics<arbitrary>], iteration_bounds = array<i64: 2, 1>, scalar_prefetch = 0 : i64, scratch_operands = 1 : i64, tpu.core_type = #tpu.core_type<tc>, window_params = [{pipeline_mode = #tpu.pipeline_mode<synchronous>, transform_indices = @transform_0, window_bounds = array<i64: 32, 16>}, {transform_indices = @transform_1, window_bounds = array<i64: 16, 32>}, {transform_indices = @transform_2, window_bounds = array<i64: 4, 16, 16>}, {transform_indices = @transform_3, window_bounds = array<i64: 4, 32, 32>}]} {
    %c0 = arith.constant 0 : index
    %c0_0 = arith.constant 0 : index
    %c0_1 = arith.constant 0 : index
    %0 = vector.load %arg4[%c0, %c0_0, %c0_1] : memref<4x16x16xf32, #tpu.memory_space<vmem>>, vector<4x16x16xf32>
    %1 = vector.shape_cast %0 : vector<4x16x16xf32> to vector<64x16xf32>
    %c0_2 = arith.constant 0 : index
    %c0_3 = arith.constant 0 : index
    %2 = vector.load %arg3[%c0_2, %c0_3] : memref<16x32xf32, #tpu.memory_space<vmem>>, vector<16x32xf32>
    %cst = arith.constant dense<0.000000e+00> : vector<64x32xf32>
    %3 = tpu.matmul %1, %2, %cst {dimension_numbers = #tpu.dot_dimension_numbers<[1], [0], [0], [1], [0, 0, 1, 1], [], []>} : vector<64x16xf32>, vector<16x32xf32>, vector<64x32xf32> -> vector<64x32xf32>
    %c0_4 = arith.constant 0 : index
    %c0_5 = arith.constant 0 : index
    %4 = vector.load %arg6[%c0_4, %c0_5] : memref<64x32xf32, #tpu.memory_space<vmem>>, vector<64x32xf32>
    tpu.vector_store %arg6[%c0_4, %c0_5], %3 {strides = array<i32>} : memref<64x32xf32, #tpu.memory_space<vmem>>, vector<64x32xf32>,
    %c0_6 = arith.constant 0 : index
    %c0_7 = arith.constant 0 : index
    %5 = vector.load %arg2[%c0_6, %c0_7] : memref<32x16xf32, #tpu.memory_space<vmem>>, vector<32x16xf32>
    %c0_i32 = arith.constant 0 : i32
    %c16_i32 = arith.constant 16 : i32
    %6 = arith.muli %c0_i32, %c16_i32 : i32
    %7 = tpu.assume_multiple %6, 8 : i32
    %8 = arith.index_cast %7 : i32 to index
    %c0_8 = arith.constant 0 : index
    %9 = vector.load %arg6[%8, %c0_8] : memref<64x32xf32, #tpu.memory_space<vmem>>, vector<16x32xf32>
    %cst_9 = arith.constant dense<0.000000e+00> : vector<32x32xf32>
    %10 = tpu.matmul %5, %9, %cst_9 {dimension_numbers = #tpu.dot_dimension_numbers<[1], [0], [0], [1], [0, 0, 1, 1], [], []>} : vector<32x16xf32>, vector<16x32xf32>, vector<32x32xf32> -> vector<32x32xf32>
    %11 = arith.index_cast %c0_i32 : i32 to index
    %c0_10 = arith.constant 0 : index
    %c0_11 = arith.constant 0 : index
    %12 = vector.load %arg5[%11, %c0_10, %c0_11] : memref<4x32x32xf32, #tpu.memory_space<vmem>>, vector<1x32x32xf32>
    %13 = vector.shape_cast %12 : vector<1x32x32xf32> to vector<32x32xf32>
    %14 = vector.shape_cast %10 : vector<32x32xf32> to vector<1x32x32xf32>
    tpu.vector_store %arg5[%11, %c0_10, %c0_11], %14 {strides = array<i32>} : memref<4x32x32xf32, #tpu.memory_space<vmem>>, vector<1x32x32xf32>,
    %c1_i32 = arith.constant 1 : i32
    %c16_i32_12 = arith.constant 16 : i32
    %15 = arith.muli %c1_i32, %c16_i32_12 : i32
    %16 = tpu.assume_multiple %15, 8 : i32
    %17 = arith.index_cast %16 : i32 to index
    %c0_13 = arith.constant 0 : index
    %18 = vector.load %arg6[%17, %c0_13] : memref<64x32xf32, #tpu.memory_space<vmem>>, vector<16x32xf32>
    %cst_14 = arith.constant dense<0.000000e+00> : vector<32x32xf32>
    %19 = tpu.matmul %5, %18, %cst_14 {dimension_numbers = #tpu.dot_dimension_numbers<[1], [0], [0], [1], [0, 0, 1, 1], [], []>} : vector<32x16xf32>, vector<16x32xf32>, vector<32x32xf32> -> vector<32x32xf32>
    %20 = arith.index_cast %c1_i32 : i32 to index
    %c0_15 = arith.constant 0 : index
    %c0_16 = arith.constant 0 : index
    %21 = vector.load %arg5[%20, %c0_15, %c0_16] : memref<4x32x32xf32, #tpu.memory_space<vmem>>, vector<1x32x32xf32>
    %22 = vector.shape_cast %21 : vector<1x32x32xf32> to vector<32x32xf32>
    %23 = vector.shape_cast %19 : vector<32x32xf32> to vector<1x32x32xf32>
    tpu.vector_store %arg5[%20, %c0_15, %c0_16], %23 {strides = array<i32>} : memref<4x32x32xf32, #tpu.memory_space<vmem>>, vector<1x32x32xf32>,
    %c2_i32 = arith.constant 2 : i32
    %c16_i32_17 = arith.constant 16 : i32
    %24 = arith.muli %c2_i32, %c16_i32_17 : i32
    %25 = tpu.assume_multiple %24, 8 : i32
    %26 = arith.index_cast %25 : i32 to index
    %c0_18 = arith.constant 0 : index
    %27 = vector.load %arg6[%26, %c0_18] : memref<64x32xf32, #tpu.memory_space<vmem>>, vector<16x32xf32>
    %cst_19 = arith.constant dense<0.000000e+00> : vector<32x32xf32>
    %28 = tpu.matmul %5, %27, %cst_19 {dimension_numbers = #tpu.dot_dimension_numbers<[1], [0], [0], [1], [0, 0, 1, 1], [], []>} : vector<32x16xf32>, vector<16x32xf32>, vector<32x32xf32> -> vector<32x32xf32>
    %29 = arith.index_cast %c2_i32 : i32 to index
    %c0_20 = arith.constant 0 : index
    %c0_21 = arith.constant 0 : index
    %30 = vector.load %arg5[%29, %c0_20, %c0_21] : memref<4x32x32xf32, #tpu.memory_space<vmem>>, vector<1x32x32xf32>
    %31 = vector.shape_cast %30 : vector<1x32x32xf32> to vector<32x32xf32>
    %32 = vector.shape_cast %28 : vector<32x32xf32> to vector<1x32x32xf32>
    tpu.vector_store %arg5[%29, %c0_20, %c0_21], %32 {strides = array<i32>} : memref<4x32x32xf32, #tpu.memory_space<vmem>>, vector<1x32x32xf32>,
    %c3_i32 = arith.constant 3 : i32
    %c16_i32_22 = arith.constant 16 : i32
    %33 = arith.muli %c3_i32, %c16_i32_22 : i32
    %34 = tpu.assume_multiple %33, 8 : i32
    %35 = arith.index_cast %34 : i32 to index
    %c0_23 = arith.constant 0 : index
    %36 = vector.load %arg6[%35, %c0_23] : memref<64x32xf32, #tpu.memory_space<vmem>>, vector<16x32xf32>
    %cst_24 = arith.constant dense<0.000000e+00> : vector<32x32xf32>
    %37 = tpu.matmul %5, %36, %cst_24 {dimension_numbers = #tpu.dot_dimension_numbers<[1], [0], [0], [1], [0, 0, 1, 1], [], []>} : vector<32x16xf32>, vector<16x32xf32>, vector<32x32xf32> -> vector<32x32xf32>
    %38 = arith.index_cast %c3_i32 : i32 to index
    %c0_25 = arith.constant 0 : index
    %c0_26 = arith.constant 0 : index
    %39 = vector.load %arg5[%38, %c0_25, %c0_26] : memref<4x32x32xf32, #tpu.memory_space<vmem>>, vector<1x32x32xf32>
    %40 = vector.shape_cast %39 : vector<1x32x32xf32> to vector<32x32xf32>
    %41 = vector.shape_cast %37 : vector<32x32xf32> to vector<1x32x32xf32>
    tpu.vector_store %arg5[%38, %c0_25, %c0_26], %41 {strides = array<i32>} : memref<4x32x32xf32, #tpu.memory_space<vmem>>, vector<1x32x32xf32>,
    %c4_i32 = arith.constant 4 : i32
    return
  }
  func.func @transform_0(%arg0: i32, %arg1: i32) -> (i32, i32) {
    %c0_i32 = arith.constant 0 : i32
    %c0_i32_0 = arith.constant 0 : i32
    %c0_i32_1 = arith.constant 0 : i32
    return %c0_i32, %c0_i32_0 : i32, i32
  }
  func.func @transform_1(%arg0: i32, %arg1: i32) -> (i32, i32) {
    %c0_i32 = arith.constant 0 : i32
    %c0_i32_0 = arith.constant 0 : i32
    return %c0_i32, %arg1 : i32, i32
  }
  func.func @transform_2(%arg0: i32, %arg1: i32) -> (i32, i32, i32) {
    %c0_i32 = arith.constant 0 : i32
    %c0_i32_0 = arith.constant 0 : i32
    %c0_i32_1 = arith.constant 0 : i32
    return %arg0, %c0_i32, %c0_i32_0 : i32, i32, i32
  }
  func.func @transform_3(%arg0: i32, %arg1: i32) -> (i32, i32, i32) {
    %c0_i32 = arith.constant 0 : i32
    %c0_i32_0 = arith.constant 0 : i32
    return %arg0, %c0_i32, %arg1 : i32, i32, i32
  }
}

</mosaic_0001>

<bundles_post_ra>
// kernel: scaler_forward.1
= control target key start
LH: loop header
LB: loop body
LE: loop exit
PB: predicated region body
PF: predicated region fallthrough
CT: control target
= control target key end

     0   :  { %8 = vsyncpa [#allocation4], 0  ;;  %s1694_s0 = inlined_call_operand.hbm [shape: f32[32,16], index: 0, kind: input, shape index: {}]   ;;  %s1695_s1 = inlined_call_operand.hbm [shape: f32[16,32], index: 1, kind: input, shape index: {}]   ;;  %s1696_s2 = inlined_call_operand.hbm [shape: f32[8,16,16], index: 2, kind: input, shape index: {}]   ;;  %s1697_s3 = inlined_call_operand.hbm [shape: f32[8,32,32], index: 3, kind: output, shape index: {}]  }
   0x1   :  { %9 = vsyncpa [#allocation7], 0 }
   0x2   :  { %10 = vsyncpa [#allocation5], 0 }
   0x3   :  { %12 = vsyncpa [#allocation5 + $0x1], 0  ;;  %s1359_s12 = smov 0   ;;  %s1361_s13 = smov 0  }
   0x4   :  { %s1363_s14 = smov 0   ;;  %s1365_s15 = smov 0  }
   0x5   :  { %s1367_s16 = smov 0   ;;  %s1369_s17 = smov 0  }
   0x6 LB: > { %s1390_s18 = sadd.s32 4294967295, %s1329_s17   ;;  %s896_s19 = sadd.s32 4294967294, %s1329_s17   ;;  %s1329_s17 = sphi %s1369_s17, %s18_s17   ;;  %s1325_s16 = sphi %s1367_s16, %s1722_s16   ;;  %s1321_s15 = sphi %s1365_s15, %s1721_s15   ;;  %s1317_s14 = sphi %s1363_s14, %s1720_s14   ;;  %s1313_s13 = sphi %s1361_s13, %s1719_s13   ;;  %s1309_s12 = sphi %s1359_s12, %s1718_s12  }
   0x7   : > { %p91_p0 = scmp.ne.s32.totalorder %s1317_s14, %s1313_s13  ;;  %p92_p1 = scmp.eq.s32.totalorder %s1329_s17, 0 }
   0x8   : > { %p97_p2 = scmp.ne.s32.totalorder %s1313_s13, %s1309_s12  ;;  %p1698_p3 = scmp.eq.s32.totalorder %s1390_s18, 0 }
   0x9   : > { %p1399_p4 = por %p92_p1, %p91_p0  ;;  %p123_p5 = scmp.eq.s32.totalorder %s1390_s18, 1 }
   0xa   : > { %p1406_p6 = por %p1698_p3, %p97_p2  ;;  %p129_p7 = scmp.eq.s32.totalorder %s896_s19, 1 }
   0xb   : > { %p1410_p8 = por %p123_p5, %p91_p0  ;;  %p897_p9 = scmp.ge.s32.totalorder %s1329_s17, 1 }
   0xc   : > { %s1703_s21 = scalar_select %p1406_p6, 1, 0 }
   0xd   : > { %s1704_s22 = scalar_select %p1410_p8, 1, 0 }
   0xe   : > { %p1415_p10 = por %p129_p7, %p97_p2  ;;  %p136_p11 = scmp.lt.s32.totalorder %s1329_s17, 3 }
   0xf   : > { %s1331_s25 = smov [#allocation3]   ;;  %p1095_p1 = scmp.lt.s32.totalorder %s1329_s17, 2 }
  0x10   : > { %s1705_s23 = scalar_select %p1415_p10, 1, 0 }
  0x11   : > { %p1420_p12 = pnand %p897_p9, %p136_p11  ;;  %s148_s26 = sshll.u32 %s1331_s25, 4  ;;  %s1424_s26 = int_to_ptr.vmem [resolvable:$true] %s148_s26 }
  0x12   : > { %p1438_p2 = pnand %p1095_p1, %p1399_p4  ;;  %s1332_s29 = smov [#allocation6]  }
  0x13   : > { %p1078_p13 = pneg %p1420_p12  ;;  %s163_s30 = sshll.u32 %s1332_s29, 4  ;;  %s1442_s30 = int_to_ptr.vmem [resolvable:$true] %s163_s30 }
  0x14   : > { %s1153_s6 = scalar_lea.hbm %s1694_s0, 512 }
  0x15   : > { %p1432_p5 = pnand %p1078_p13, %p1698_p3  ;;  %p1154_p7 = scmp.ne.s32.totalorder %s1694_s0, %s1153_s6 }
  0x16   : > { %p1160_p13 = scmp.lt.u32.totalorder %s1153_s6, %s1694_s0 }
  0x17   : > { %p1155_p9 = pneg %p1432_p5 }
  0x19   : > { %p1156_p4 = pnand %p1155_p9, %p1154_p7 }
  0x1b   : > { %p1157_p11 = pneg %p1156_p4 }
  0x1d   : > { %p1162_p1 = pnand %p1160_p13, %p1157_p11 }
  0x1f   : > { %1165 = shalt.err (!%p1162_p1)
}
  0x20   : > { %s1166_s11 = scalar_lea.vmem %s1424_s26, 512  ;;  %p1174_p8 = scmp.lt.s32.totalorder %s1424_s26, %s1424_s26 }
  0x21   : > { %p1167_p0 = scmp.ne.s32.totalorder %s1424_s26, %s1166_s11  ;;  %p1175_p7 = scmp.lt.s32.totalorder %s1166_s11, %s1166_s11 }
  0x23   : > { %p1169_p3 = pnand %p1167_p0, %p1155_p9  ;;  %p1176_p4 = por %p1175_p7, %p1174_p8 }
  0x25   : > { %p1170_p10 = pneg %p1169_p3 }
  0x27   : > { %p1177_p6 = pnand %p1176_p4, %p1170_p10 }
  0x29   : > { %1180 = shalt.err (!%p1177_p6)
}
  0x2a   : > { %s1701_s19 = smov 128   ;;  %s1334_s20 = smov 8  }
  0x2b   : > { %1081 = dma.hbm_to_vmem [thread:$0]  (!%p1432_p5), %s1694_s0, 512, %s1424_s26, [#allocation4], %s1701_s19, %s1701_s19, %s1334_s20  }
  0x2c   : > { %s1181_s6 = scalar_lea.hbm %s1695_s1, 256 }
  0x2d   : > { %p1182_p3 = scmp.ne.s32.totalorder %s1695_s1, %s1181_s6  ;;  %p1188_p10 = scmp.lt.u32.totalorder %s1181_s6, %s1695_s1 }
  0x2f   : > { %p1184_p6 = pnand %p1182_p3, %p1155_p9 }
  0x31   : > { %p1185_p8 = pneg %p1184_p6 }
  0x33   : > { %p1190_p0 = pnand %p1188_p10, %p1185_p8 }
  0x35   : > { %1193 = shalt.err (!%p1190_p0)
}
  0x36   : > { %s1194_s26 = scalar_lea.vmem %s1442_s30, 256  ;;  %p1202_p7 = scmp.lt.s32.totalorder %s1442_s30, %s1442_s30 }
  0x37   : > { %p1195_p11 = scmp.ne.s32.totalorder %s1442_s30, %s1194_s26  ;;  %p1203_p4 = scmp.lt.s32.totalorder %s1194_s26, %s1194_s26 }
  0x39   : > { %p1197_p13 = pnand %p1195_p11, %p1155_p9  ;;  %p1204_p3 = por %p1203_p4, %p1202_p7 }
  0x3b   : > { %p1198_p1 = pneg %p1197_p13 }
  0x3d   : > { %p1205_p6 = pnand %p1204_p3, %p1198_p1 }
  0x3f   : > { %1208 = shalt.err (!%p1205_p6)
}
  0x40   : > { %1084 = dma.hbm_to_vmem [thread:$0]  (!%p1432_p5), %s1695_s1, 256, %s1442_s30, [#allocation7], %s1701_s19, %s1701_s19, %s1334_s20  }
  0x41   : > { %s84_s29 = sadd.s32 1, %s1317_s14  ;;  %s30_s4 = sadd.s32 1, %s1325_s16 }
  0x42   : > { %s177_s5 = sand.u32 1, %s1329_s17   ;;  %p32_p9 = scmp.ge.s32.totalorder %s30_s4, 2 }
  0x43   : > { %s179_s27 = sand.u32 1, %s1317_s14   ;;  %s953_s6 = sshll.u32 %s1325_s16, 10 }
  0x44   : > { %s1724_s4 = smov (%p32_p9, %s30_s4), 0  ;;  %s901_s7 = sshll.u32 %s179_s27, 6 }
  0x45   : > { %s1512_s10 = scalar_lea.hbm %s1696_s2, %s953_s6  ;;  %s81_s30 = ssub.s32 %s1325_s16, %s1724_s4 }
  0x46   : > { %p82_p5 = scmp.eq.s32.totalorder %s81_s30, 0  ;;  %s181_s26 = scalar_lea.vmem [#allocation8], %s901_s7 }
  0x47   : > { %s189_s11 = sshll.u32 %s181_s26, 4  ;;  %s1521_s19 = scalar_lea.sflag [#allocation4], %s177_s5  ;;  %s1516_s11 = int_to_ptr.vmem [resolvable:$true] %s189_s11 }
  0x48   : > { %s1519_s25 = scalar_select %p82_p5, %s1317_s14, %s84_s29  }
  0x49   : > { %s1209_s27 = scalar_lea.hbm %s1512_s10, 1024  ;;  %p1211_p10 = pneg %p1438_p2 }
  0x4a   : > { %p1210_p8 = scmp.ne.s32.totalorder %s1512_s10, %s1209_s27  ;;  %s1214_s9 = scalar_lea.hbm %s1696_s2, 2048 }
  0x4b   : > { %p1215_p13 = scmp.lt.u32.totalorder %s1512_s10, %s1696_s2  ;;  %p1216_p1 = scmp.lt.u32.totalorder %s1214_s9, %s1209_s27 }
  0x4c   : > { %p1212_p0 = pnand %p1211_p10, %p1210_p8  ;;  %p1218_p4 = scmp.lt.u32.totalorder %s1209_s27, %s1512_s10 }
  0x4d   : > { %p1217_p7 = por %p1216_p1, %p1215_p13 }
  0x4e   : > { %p1213_p11 = pneg %p1212_p0 }
  0x4f   : > { %p1219_p3 = por %p1218_p4, %p1217_p7 }
  0x51   : > { %p1220_p6 = pnand %p1219_p3, %p1213_p11 }
  0x53   : > { %1223 = shalt.err (!%p1220_p6)
}
  0x54   : > { %s1224_s29 = scalar_lea.vmem %s1516_s11, 1024  ;;  %s1335_s5 = smov [#allocation8]  }
  0x55   : > { %p1225_p9 = scmp.ne.s32.totalorder %s1516_s11, %s1224_s29  ;;  %s1229_s26 = sshll.u32 %s1335_s5, 4  ;;  %s1230_s26 = int_to_ptr.vmem [resolvable:$false] %s1229_s26 }
  0x56   : > { %s1231_s6 = scalar_lea.vmem %s1230_s26, 2048  ;;  %p1232_p0 = scmp.lt.s32.totalorder %s1516_s11, %s1230_s26 }
  0x57   : > { %p1227_p5 = pnand %p1225_p9, %p1211_p10  ;;  %p1233_p13 = scmp.lt.s32.totalorder %s1231_s6, %s1224_s29 }
  0x59   : > { %p1228_p8 = pneg %p1227_p5  ;;  %p1234_p1 = por %p1233_p13, %p1232_p0 }
  0x5b   : > { %p1235_p7 = pnand %p1234_p1, %p1228_p8 }
  0x5d   : > { %1238 = shalt.err (!%p1235_p7)
}
  0x5e   : > { %s1709_s27 = smov 128   ;;  %201 = sbr.rel (%p1420_p12) target bundleno = 592 (0x250), region = 32 }
  0x5f   : > { %1088 = dma.hbm_to_vmem [thread:$0]  (!%p1438_p2), %s1512_s10, 1024, %s1516_s11, %s1521_s19, %s1709_s27, %s1709_s27, %s1334_s20  }
  0x60   : > { %p1710_p10 = scmp.eq.s32.totalorder (!%p1420_p12), %s1390_s18, 0 }
  0x65   : > { %1292 = dma.done.wait (%p1710_p10), [#allocation4], 512   ;;  %p1711_p11 = pmov %p1710_p10 }
  0x66   : > { %p1712_p4 = pmov %p1710_p10 }
  0x67   : > { %1294 = vsyncadd (%p1711_p11), [#allocation4], 4294966784 }
  0x68   : > { %1296 = dma.done.wait (%p1712_p4), [#allocation7], 256   ;;  %p1713_p3 = pmov %p1712_p4 }
  0x69   : > { %s211_s28 = sand.u32 1, %s1390_s18   ;;  %s1564_s19 = sand.u32 1, %s1313_s13  }
  0x6a   : > { %1298 = vsyncadd (%p1713_p3), [#allocation7], 4294967040  ;;  %s908_s24 = sshll.u32 %s1564_s19, 6  ;;  %s212_s20 = scalar_lea.sflag [#allocation4], %s211_s28 }
  0x6b   : > { %s215_s10 = scalar_lea.vmem [#allocation8], %s908_s24  ;;  %p1714_p12 = scmp.ne.s32.totalorder %s1703_s21, 0 }
  0x6d   : > { %1300 = dma.done.wait (%p1714_p12), %s212_s20, 1024  }
  0x6e   : > { %1302 = vsyncadd (%p1714_p12), %s212_s20, 4294966272  ;;  %vm250_vm0 = vcmask 130048   ;;  %v248_v0 = vld [vmem:[#allocation6] sm:$0xff]  ;;  %v249_v1 = vld [vmem:[#allocation6 + $0x8] sm:$0xff]  ;;  %vm380_vm1 = vcmask 261120   ;;  %s909_s18 = sshll.u32 %s1564_s19, 7 }
  0x6f   : > { %v240_v2 = vld [vmem:[%s215_s10] sm:$0xff]  ;;  %v1046_v3 = vpack.c.bf16 %v249_v1, %v248_v0  ;;  %v241_v4 = vld [vmem:[%s215_s10 + $0x8] sm:$0xff]  ;;  %v242_v5 = vld [vmem:[%s215_s10 + $0x10] sm:$0xff]  ;;  %s1604_s21 = scalar_lea.vmem [#allocation9], %s909_s18  ;;  %s955_s11 = sshll.u32 %s1321_s15, 11 }
  0x70   : > { %994 = vmatprep.mubr.msk.f32.mxu0 %vm250_vm0, %v240_v2  ;;  %v243_v6 = vld [vmem:[%s215_s10 + $0x18] sm:$0xff]  ;;  %v244_v7 = vld [vmem:[%s215_s10 + $0x20] sm:$0xff]  ;;  %v245_v8 = vld [vmem:[%s215_s10 + $0x28] sm:$0xff]  ;;  %s791_s8 = sshll.u32 %s1604_s21, 4  ;;  %s1639_s30 = scalar_lea.hbm %s1697_s3, %s955_s11  ;;  %s1641_s8 = int_to_ptr.vmem [resolvable:$true] %s791_s8 }
  0x71   : > { %1047 = vmatprep.subr.bf16.mxu0 %v1046_v3  ;;  %v246_v9 = vld [vmem:[%s215_s10 + $0x30] sm:$0xff]  ;;  %v247_v10 = vld [vmem:[%s215_s10 + $0x38] sm:$0xff]  ;;  %v391_v27 = vld [vmem:[#allocation3 + $0x10] sm:$0xff]  ;;  %s776_s15 = scalar_lea.sflag [#allocation5], %s1564_s19  ;;  %s1239_s29 = scalar_lea.vmem %s1641_s8, 2048 }
  0x72   : > { %1049 = vmatpush3.bf16.msra.mxu0 %v1046_v3  ;;  %v389_v11 = vld [vmem:[#allocation3] sm:$0xff]  ;;  %v390_v25 = vld [vmem:[#allocation3 + $0x8] sm:$0xff]  ;;  %v392_v30 = vld [vmem:[#allocation3 + $0x18] sm:$0xff]  ;;  %p1240_p2 = scmp.ne.s32.totalorder %s1641_s8, %s1239_s29  ;;  %p1715_p6 = scmp.ne.s32.totalorder %s1704_s22, 0 }
  0x73   : > { %1010 = vmatprep.mubr.msk.f32.mxu1 %vm250_vm0, %v389_v11  ;;  %s1336_s5 = smov [#allocation9]  }
  0x74   : > { %p1241_p9 = pnand %p1240_p2, %p1715_p6  ;;  %s1243_s26 = sshll.u32 %s1336_s5, 4  ;;  %s1244_s26 = int_to_ptr.vmem [resolvable:$false] %s1243_s26 }
  0x75   : > { %995 = vmatmul.mubr.msk.f32.vlgmr.msra.gmra.mrb[0].mxu0 %vm250_vm0, %v241_v4  ;;  %s1245_s6 = scalar_lea.vmem %s1244_s26, 4096  ;;  %p1246_p8 = scmp.lt.s32.totalorder %s1641_s8, %s1244_s26 }
  0x76   : > { %997 = vmatprep.mubr.msk.f32.mxu0 %vm250_vm0, %v242_v5  ;;  %p1242_p5 = pneg %p1241_p9  ;;  %p1247_p0 = scmp.lt.s32.totalorder %s1245_s6, %s1239_s29 }
  0x78   : > { %p1248_p13 = por %p1247_p0, %p1246_p8 }
  0x79   : > { %998 = vmatmul.mubr.msk.f32.gmra.mrb[2].mxu0 %vm250_vm0, %v243_v6 }
  0x7a   : > { %1000 = vmatprep.mubr.msk.f32.mxu0 %vm250_vm0, %v244_v7  ;;  %p1249_p1 = pnand %p1248_p13, %p1242_p5 }
  0x7d   : > { %1001 = vmatmul.mubr.msk.f32.gmra.mrb[4].mxu0 %vm250_vm0, %v245_v8 }
  0x7e   : > { %1003 = vmatprep.mubr.msk.f32.mxu0 %vm250_vm0, %v246_v9 }
  0x81   : > { %1004 = vmatmul.mubr.msk.f32.gmra.mrb[6].mxu0 %vm250_vm0, %v247_v10 }
  0x82   : > { %1030 = vmatprep.mubr.msk.f32.mxu0 %vm250_vm0, %v389_v11 }
 0x148   : > { %v996_v12 = vpop.f32.mrb[0].mxu0 }
 0x149   : > { %382 = vst.msk [vmem:[#allocation2 + $0x8] sm:$0xff] %vm380_vm1, %v996_v12  ;;  %v341_v13 = vpop.f32.mrb[1].mxu0 }
 0x14a   : > { %381 = vst.msk [vmem:[#allocation2] sm:$0xff] %vm380_vm1, %v341_v13 }
 0x14c   : > { %v999_v14 = vpop.f32.mrb[2].mxu0 }
 0x14d   : > { %384 = vst.msk [vmem:[#allocation2 + $0x18] sm:$0xff] %vm380_vm1, %v999_v14  ;;  %v351_v15 = vpop.f32.mrb[3].mxu0 }
 0x14e   : > { %383 = vst.msk [vmem:[#allocation2 + $0x10] sm:$0xff] %vm380_vm1, %v351_v15 }
 0x150   : > { %v1002_v16 = vpop.f32.mrb[4].mxu0  ;;  %v394_v17 = vld [vmem:[#allocation2 + $0x8] sm:$0xff] }
 0x151   : > { %386 = vst.msk [vmem:[#allocation2 + $0x28] sm:$0xff] %vm380_vm1, %v1002_v16  ;;  %v361_v18 = vpop.f32.mrb[5].mxu0  ;;  %v393_v19 = vld [vmem:[#allocation2] sm:$0xff] }
 0x152   : > { %385 = vst.msk [vmem:[#allocation2 + $0x20] sm:$0xff] %vm380_vm1, %v361_v18  ;;  %v1050_v20 = vpack.c.bf16 %v394_v17, %v393_v19 }
 0x154   : > { %1051 = vmatprep.subr.bf16.mxu1 %v1050_v20  ;;  %v1005_v21 = vpop.f32.mrb[6].mxu0  ;;  %v498_v22 = vld [vmem:[#allocation2 + $0x18] sm:$0xff] }
 0x155   : > { %1053 = vmatpush3.bf16.msra.mxu1 %v1050_v20  ;;  %388 = vst.msk [vmem:[#allocation2 + $0x38] sm:$0xff] %vm380_vm1, %v1005_v21  ;;  %v371_v23 = vpop.f32.mrb[7].mxu0  ;;  %v497_v24 = vld [vmem:[#allocation2 + $0x10] sm:$0xff] }
 0x156   : > { %387 = vst.msk [vmem:[#allocation2 + $0x30] sm:$0xff] %vm380_vm1, %v371_v23  ;;  %v1054_v26 = vpack.c.bf16 %v498_v22, %v497_v24 }
 0x158   : > { %1055 = vmatprep.subr.bf16.mxu1 %v1054_v26  ;;  %1011 = vmatmul.mubr.msk.f32.vlgmr.msra.gmra.mrb[0].mxu1 %vm250_vm0, %v390_v25  ;;  %v591_v28 = vld [vmem:[#allocation2 + $0x28] sm:$0xff] }
 0x159   : > { %1057 = vmatpush3.bf16.msra.mxu1 %v1054_v26  ;;  %v590_v29 = vld [vmem:[#allocation2 + $0x20] sm:$0xff]  ;;  %1013 = vmatprep.mubr.msk.f32.mxu1 %vm250_vm0, %v391_v27 }
 0x15a   : > { %v1058_v31 = vpack.c.bf16 %v591_v28, %v590_v29 }
 0x15c   : > { %1059 = vmatprep.subr.bf16.mxu0 %v1058_v31  ;;  %1014 = vmatmul.mubr.msk.f32.gmra.mrb[2].mxu1 %vm250_vm0, %v392_v30  ;;  %v684_v32 = vld [vmem:[#allocation2 + $0x38] sm:$0xff] }
 0x15d   : > { %1061 = vmatpush3.bf16.msra.mxu0 %v1058_v31  ;;  %1020 = vmatprep.mubr.msk.f32.mxu1 %vm250_vm0, %v389_v11  ;;  %v683_v33 = vld [vmem:[#allocation2 + $0x30] sm:$0xff] }
 0x15e   : > { %v1062_v34 = vpack.c.bf16 %v684_v32, %v683_v33 }
 0x160   : > { %1063 = vmatprep.subr.bf16.mxu1 %v1062_v34  ;;  %1021 = vmatmul.mubr.msk.f32.vlgmr.msra.gmra.mrb[4].mxu1 %vm250_vm0, %v390_v25 }
 0x161   : > { %1065 = vmatpush3.bf16.msra.mxu1 %v1062_v34  ;;  %1023 = vmatprep.mubr.msk.f32.mxu1 %vm250_vm0, %v391_v27 }
 0x162   : > { %1031 = vmatmul.mubr.msk.f32.vlgmr.msra.gmra.mrb[8].mxu0 %vm250_vm0, %v390_v25 }
 0x163   : > { %1033 = vmatprep.mubr.msk.f32.mxu0 %vm250_vm0, %v391_v27 }
 0x164   : > { %1024 = vmatmul.mubr.msk.f32.gmra.mrb[6].mxu1 %vm250_vm0, %v392_v30 }
 0x165   : > { %1040 = vmatprep.mubr.msk.f32.mxu1 %vm250_vm0, %v389_v11 }
 0x166   : > { %1034 = vmatmul.mubr.msk.f32.gmra.mrb[10].mxu0 %vm250_vm0, %v392_v30 }
 0x168   : > { %1041 = vmatmul.mubr.msk.f32.vlgmr.msra.gmra.mrb[8].mxu1 %vm250_vm0, %v390_v25 }
 0x169   : > { %1043 = vmatprep.mubr.msk.f32.mxu1 %vm250_vm0, %v391_v27 }
 0x16c   : > { %1044 = vmatmul.mubr.msk.f32.gmra.mrb[10].mxu1 %vm250_vm0, %v392_v30 }
 0x22b   : > { %v1012_v35 = vpop.f32.mrb[0].mxu1 }
 0x22c   : > { %493 = vst.msk [vmem:[%s1604_s21 + $0x8] sm:$0xff] %vm380_vm1, %v1012_v35  ;;  %v473_v36 = vpop.f32.mrb[1].mxu1 }
 0x22d   : > { %492 = vst.msk [vmem:[%s1604_s21] sm:$0xff] %vm380_vm1, %v473_v36 }
 0x22f   : > { %v1015_v37 = vpop.f32.mrb[2].mxu1 }
 0x230   : > { %495 = vst.msk [vmem:[%s1604_s21 + $0x18] sm:$0xff] %vm380_vm1, %v1015_v37  ;;  %v483_v38 = vpop.f32.mrb[3].mxu1 }
 0x231   : > { %494 = vst.msk [vmem:[%s1604_s21 + $0x10] sm:$0xff] %vm380_vm1, %v483_v38 }
 0x233   : > { %v1022_v39 = vpop.f32.mrb[4].mxu1 }
 0x234   : > { %927 = vst.msk [vmem:[%s1604_s21 + $0x28] sm:$0xff] %vm380_vm1, %v1022_v39  ;;  %v565_v40 = vpop.f32.mrb[5].mxu1 }
 0x235   : > { %926 = vst.msk [vmem:[%s1604_s21 + $0x20] sm:$0xff] %vm380_vm1, %v565_v40  ;;  %v1032_v41 = vpop.f32.mrb[8].mxu0 }
 0x236   : > { %935 = vst.msk [vmem:[%s1604_s21 + $0x48] sm:$0xff] %vm380_vm1, %v1032_v41  ;;  %v658_v42 = vpop.f32.mrb[9].mxu0 }
 0x237   : > { %v1025_v43 = vpop.f32.mrb[6].mxu1  ;;  %934 = vst.msk [vmem:[%s1604_s21 + $0x40] sm:$0xff] %vm380_vm1, %v658_v42 }
 0x238   : > { %929 = vst.msk [vmem:[%s1604_s21 + $0x38] sm:$0xff] %vm380_vm1, %v1025_v43  ;;  %v575_v44 = vpop.f32.mrb[7].mxu1 }
 0x239   : > { %928 = vst.msk [vmem:[%s1604_s21 + $0x30] sm:$0xff] %vm380_vm1, %v575_v44  ;;  %v1035_v45 = vpop.f32.mrb[10].mxu0 }
 0x23a   : > { %937 = vst.msk [vmem:[%s1604_s21 + $0x58] sm:$0xff] %vm380_vm1, %v1035_v45  ;;  %v668_v46 = vpop.f32.mrb[11].mxu0 }
 0x23b   : > { %v1042_v47 = vpop.f32.mrb[8].mxu1  ;;  %936 = vst.msk [vmem:[%s1604_s21 + $0x50] sm:$0xff] %vm380_vm1, %v668_v46 }
 0x23c   : > { %943 = vst.msk [vmem:[%s1604_s21 + $0x68] sm:$0xff] %vm380_vm1, %v1042_v47  ;;  %v751_v48 = vpop.f32.mrb[9].mxu1 }
 0x23d   : > { %942 = vst.msk [vmem:[%s1604_s21 + $0x60] sm:$0xff] %vm380_vm1, %v751_v48 }
 0x23f   : > { %v1045_v49 = vpop.f32.mrb[10].mxu1 }
 0x240   : > { %945 = vst.msk [vmem:[%s1604_s21 + $0x78] sm:$0xff] %vm380_vm1, %v1045_v49  ;;  %v761_v50 = vpop.f32.mrb[11].mxu1 }
 0x241   : > { %944 = vst.msk [vmem:[%s1604_s21 + $0x70] sm:$0xff] %vm380_vm1, %v761_v50 }
 0x242   : > { %1252 = shalt.err (!%p1249_p1)
}
 0x243   : > { %s1253_s27 = scalar_lea.hbm %s1639_s30, 2048  ;;  %s1257_s20 = scalar_lea.hbm %s1697_s3, 4096 }
 0x244   : > { %p1254_p7 = scmp.ne.s32.totalorder %s1639_s30, %s1253_s27  ;;  %p1258_p4 = scmp.lt.u32.totalorder %s1639_s30, %s1697_s3 }
 0x245   : > { %p1259_p3 = scmp.lt.u32.totalorder %s1257_s20, %s1253_s27  ;;  %p1261_p2 = scmp.lt.u32.totalorder %s1253_s27, %s1639_s30 }
 0x246   : > { %p1255_p10 = pnand %p1254_p7, %p1715_p6 }
 0x247   : > { %p1260_p12 = por %p1259_p3, %p1258_p4 }
 0x248   : > { %p1256_p11 = pneg %p1255_p10 }
 0x249   : > { %p1262_p9 = por %p1261_p2, %p1260_p12 }
 0x24b   : > { %p1263_p5 = pnand %p1262_p9, %p1256_p11 }
 0x24d   : > { %1266 = shalt.err (!%p1263_p5)
}
 0x24e   : > { %s1337_s21 = smov 128   ;;  %s1338_s11 = smov 8  }
 0x24f   : > { %1076 = dma.vmem_to_hbm [thread:$0]  (%p1715_p6), %s1641_s8, 2048, %s1639_s30, %s776_s15, %s1337_s21, %s1337_s21, %s1338_s11  }
 0x250 PF: > { %s806_s9 = sand.u32 1, %s1309_s12   ;;  %p1716_p8 = scmp.ne.s32.totalorder %s1705_s23, 0 }
 0x251   : > { %p1717_p0 = scmp.ge.s32.totalorder %s1329_s17, 2  ;;  %s807_s7 = scalar_lea.sflag [#allocation5], %s806_s9 }
 0x253   : > { %p1090_p13 = pnand %p1717_p0, %p1716_p8 }
 0x255   : > { %1304 = dma.done.wait (!%p1090_p13), %s807_s7, 2048  }
 0x256   : > { %1306 = vsyncadd (!%p1090_p13), %s807_s7, 4294965248  ;;  %s18_s17 = sadd.s32 1, %s1329_s17   ;;  %s1718_s12 = smov %s1313_s13 }
 0x257   : > { %p15_p1 = scmp.ge.s32.totalorder %s18_s17, 4   ;;  %s1719_s13 = smov %s1317_s14 }
 0x258   : > { %s1720_s14 = smov %s1519_s25  ;;  %s1721_s15 = smov %s1325_s16 }
 0x259   : > { %s1722_s16 = smov %s1724_s4  ;;  %17 = sbr.rel (!%p15_p1) target bundleno = 6 (0x6), region = 91 }
 0x260   :  { %812 = vsyncpa [#allocation4], 1 }
 0x261   :  { %814 = vsyncpa [#allocation4 + $0x1], 1 }
 0x262   :  { %815 = vsyncpa [#allocation7], 1 }
 0x263   :  { %816 = vsyncpa [#allocation5], 1 }
 0x264   :  { %818 = vsyncpa [#allocation5 + $0x1], 1 }

</bundles_post_ra>
